<compile_context>
chip_gen: v7x
topology: tpu7x:2x2x1
jax: 0.10.0
libtpu: 0.0.40
codegen_flags: <defaults>
</compile_context>

<pallas_src>
import jax
import jax.numpy as jnp
from jax.experimental import pallas as pl
from jax.experimental.pallas import tpu as pltpu

F_MAP = 100   # output_feature_map of the torch model
F_PAD = 128   # lane-padded per-tap feature width


# --------------------------------------------------------------------------
# Kernel
# --------------------------------------------------------------------------
def make_kernel(conv_width, f_pad):
    def kernel(x_ref, wcat_ref, bcat_ref, wlp_ref, bl_ref, out_ref):
        Bt, L, E = x_ref.shape

        # One big MXU matmul for every conv tap of every branch.
        x2d = x_ref[...].reshape(Bt * L, E).astype(wcat_ref.dtype)   # bf16
        y = jnp.dot(x2d, wcat_ref[...],
                    preferred_element_type=jnp.float32)              # (Bt*L, 10*f_pad)
        y = y.reshape(Bt, L, y.shape[-1])                            # (Bt, L, 10*f_pad)

        pooled = []
        off = 0
        for k in range(1, conv_width + 1):
            T = L - k + 1
            # conv_k[b, t, :] = sum_j y[b, t + j, tap(k, j)]
            acc = y[:, 0:T, off:off + f_pad]
            for j in range(1, k):
                acc = acc + y[:, j:j + T, off + j * f_pad:off + (j + 1) * f_pad]
            off += k * f_pad
            # MaxPool1d over the full conv output length, then bias + ReLU
            # (exact reorder: bias is time-constant, max/ReLU are monotone).
            m = jnp.max(acc, axis=1)                                 # (Bt, f_pad)
            pooled.append(jnp.maximum(m + bcat_ref[k - 1:k, :], 0.0))

        # Fused final Linear: concat along lanes (each branch is 128 lanes wide)
        # and one (Bt, 4*f_pad) x (4*f_pad, 2) dot. Padded rows/cols are zero.
        pcat = jnp.concatenate(pooled, axis=-1)                      # (Bt, cw*f_pad)
        logits = jnp.dot(pcat, wlp_ref[...],
                         preferred_element_type=jnp.float32) + bl_ref[...]

        # Softmax over dim=1 (f32).
        mx = jnp.max(logits, axis=1, keepdims=True)
        e = jnp.exp(logits - mx)
        out_ref[...] = (e / jnp.sum(e, axis=1, keepdims=True)).astype(out_ref.dtype)

    return kernel


# --------------------------------------------------------------------------
# Wrapper
# --------------------------------------------------------------------------
def cnn_forward(x_ncl, params, *, b_tile=None):
    """x_ncl: (B, E, L) float32 (PyTorch NCW layout). Returns (B, 2) softmax."""
    x = jnp.transpose(x_ncl, (0, 2, 1))          # (B, L, E) channels-last
    B, L, E = x.shape
    wcat, bcat, wlp, bl = params['wcat'], params['bcat'], params['wlp'], params['bl']
    conv_width, f_pad = bcat.shape
    n_taps_fpad = wcat.shape[1]

    if b_tile is None:
        b_tile = B if B <= 128 else 128          # keep the (B_tile*L, 10*f_pad) slab small

    grid = (pl.cdiv(B, b_tile),)
    kernel = make_kernel(conv_width, f_pad)

    return pl.pallas_call(
        kernel,
        out_shape=jax.ShapeDtypeStruct((B, 2), jnp.float32),
        grid=grid,
        in_specs=[
            pl.BlockSpec((b_tile, L, E), lambda i: (i, 0, 0)),           # x (tiled on batch)
            pl.BlockSpec((E, n_taps_fpad), lambda i: (0, 0)),            # fused conv weights
            pl.BlockSpec((conv_width, f_pad), lambda i: (0, 0)),         # padded conv biases
            pl.BlockSpec((conv_width * f_pad, 2), lambda i: (0, 0)),     # padded linear weight
            pl.BlockSpec((1, 2), lambda i: (0, 0)),                      # linear bias
        ],
        out_specs=pl.BlockSpec((b_tile, 2), lambda i: (i, 0)),
        compiler_params=pltpu.CompilerParams(
            dimension_semantics=("parallel",)),
    )(x, wcat, bcat, wlp, bl)


# --------------------------------------------------------------------------
# Parameters: raw torch-layout init + packing into fused kernel operands
# --------------------------------------------------------------------------
def init_raw_params(key, embedding_size, conv_width=4, f_map=F_MAP):
    """Mirror the torch module's init (weights U(-.05,.05), default bias init)."""
    E = embedding_size
    keys = jax.random.split(key, 2 * conv_width + 2)
    raw = {}
    for k in range(1, conv_width + 1):
        fan_in = E * k
        bound = 1.0 / fan_in ** 0.5
        raw[f'w{k}'] = jax.random.uniform(keys[2 * (k - 1)], (f_map, E, k),
                                          jnp.float32, -0.05, 0.05)     # torch (F, E, k)
        raw[f'b{k}'] = jax.random.uniform(keys[2 * (k - 1) + 1], (f_map,),
                                          jnp.float32, -bound, bound)
    lin_in = conv_width * f_map
    bound = 1.0 / lin_in ** 0.5
    raw['wl'] = jax.random.uniform(keys[-2], (2, lin_in), jnp.float32, -0.05, 0.05)
    raw['bl'] = jax.random.uniform(keys[-1], (2,), jnp.float32, -bound, bound)
    return raw


def pack_params(raw, conv_width=4, f_map=F_MAP, f_pad=F_PAD,
                matmul_dtype=jnp.bfloat16):
    """Pack per-branch torch weights into the 4 fused kernel operands."""
    E = raw['w1'].shape[1]
    n_taps = conv_width * (conv_width + 1) // 2
    wcat = jnp.zeros((E, n_taps * f_pad), jnp.float32)
    bcat = jnp.zeros((conv_width, f_pad), jnp.float32)
    off = 0
    for k in range(1, conv_width + 1):
        w = raw[f'w{k}']                                   # (F, E, k)
        for j in range(k):
            wcat = wcat.at[:, off + j * f_pad:off + j * f_pad + f_map].set(w[:, :, j].T)
        bcat = bcat.at[k - 1, :f_map].set(raw[f'b{k}'])
        off += k * f_pad

    wlt = raw['wl'].T                                      # (4F, 2)
    wlp = jnp.zeros((conv_width * f_pad, 2), jnp.float32)
    for k in range(conv_width):
        wlp = wlp.at[k * f_pad:k * f_pad + f_map, :].set(wlt[k * f_map:(k + 1) * f_map, :])

    return {'wcat': wcat.astype(matmul_dtype),             # bf16 MXU operand
            'bcat': bcat,                                  # f32
            'wlp': wlp,                                    # f32
            'bl': raw['bl'].reshape(1, 2)}                 # f32


# --------------------------------------------------------------------------
# Pure-JAX f32 reference (exact torch semantics, eval-mode dropout)
# --------------------------------------------------------------------------
def ref_forward(x_ncl, raw, conv_width=4):
    B, E, L = x_ncl.shape
    outs = []
    for k in range(1, conv_width + 1):
        w = raw[f'w{k}']                                   # (F, E, k)
        b = raw[f'b{k}']                                   # (F,)
        T = L - k + 1
        conv = jnp.zeros((B, w.shape[0], T), jnp.float32)
        for j in range(k):
            conv = conv + jnp.einsum('bet,fe->bft', x_ncl[:, :, j:j + T], w[:, :, j])
        conv = conv + b[None, :, None]
        relu = jnp.maximum(conv, 0.0)
        outs.append(jnp.max(relu, axis=-1))                # MaxPool1d(T)
    flat = jnp.concatenate(outs, axis=1)                   # (B, 4F)
    logits = flat @ raw['wl'].T + raw['bl'][None, :]
    return jax.nn.softmax(logits, axis=1)


# --------------------------------------------------------------------------
if __name__ == "__main__":
    B, E, L = 2, 32, 16          # batch, embedding_size, max_input_size
    key = jax.random.PRNGKey(0)
    kx, kp = jax.random.split(key)

    x = jax.random.normal(kx, (B, E, L), jnp.float32)      # PyTorch NCW input
    raw = init_raw_params(kp, embedding_size=E, conv_width=4)
    params = pack_params(raw, conv_width=4)

    out = cnn_forward(x, params)
    out = jax.block_until_ready(out)

    assert out.shape == (B, 2)
    # softmax rows must sum to 1
    assert bool(jnp.allclose(jnp.sum(out, axis=1), 1.0, atol=1e-5))
    # check against the pure-JAX f32 reference (bf16 matmul tolerance)
    ref = jax.block_until_ready(ref_forward(x, raw, conv_width=4))
    assert float(jnp.max(jnp.abs(out - ref))) < 2e-2

    print("KERNEL_OK")
</pallas_src>

<mosaic_0001>
module attributes {stable_mosaic.version = 11 : i64} {
  func.func @kernel(%arg0: i32, %arg1: memref<2x16x32xf32, #tpu.memory_space<vmem>>, %arg2: memref<32x1280xbf16, #tpu.memory_space<vmem>>, %arg3: memref<4x128xf32, #tpu.memory_space<vmem>>, %arg4: memref<512x2xf32, #tpu.memory_space<vmem>>, %arg5: memref<1x2xf32, #tpu.memory_space<vmem>>, %arg6: memref<2x2xf32, #tpu.memory_space<vmem>>) attributes {dimension_semantics = [#tpu.dimension_semantics<parallel>], iteration_bounds = array<i64: 1>, scalar_prefetch = 0 : i64, scratch_operands = 0 : i64, tpu.core_type = #tpu.core_type<tc>, window_params = [{transform_indices = @transform_0, window_bounds = array<i64: 2, 16, 32>}, {pipeline_mode = #tpu.pipeline_mode<synchronous>, transform_indices = @transform_1, window_bounds = array<i64: 32, 1280>}, {pipeline_mode = #tpu.pipeline_mode<synchronous>, transform_indices = @transform_2, window_bounds = array<i64: 4, 128>}, {pipeline_mode = #tpu.pipeline_mode<synchronous>, transform_indices = @transform_3, window_bounds = array<i64: 512, 2>}, {pipeline_mode = #tpu.pipeline_mode<synchronous>, transform_indices = @transform_4, window_bounds = array<i64: 1, 2>}, {transform_indices = @transform_5, window_bounds = array<i64: 2, 2>}]} {
    %c0 = arith.constant 0 : index
    %c0_0 = arith.constant 0 : index
    %c0_1 = arith.constant 0 : index
    %0 = vector.load %arg1[%c0, %c0_0, %c0_1] : memref<2x16x32xf32, #tpu.memory_space<vmem>>, vector<2x16x32xf32>
    %1 = vector.shape_cast %0 : vector<2x16x32xf32> to vector<32x32xf32>
    %2 = arith.truncf %1 : vector<32x32xf32> to vector<32x32xbf16>
    %c0_2 = arith.constant 0 : index
    %c0_3 = arith.constant 0 : index
    %3 = vector.load %arg2[%c0_2, %c0_3] : memref<32x1280xbf16, #tpu.memory_space<vmem>>, vector<32x1280xbf16>
    %cst = arith.constant dense<0.000000e+00> : vector<32x1280xf32>
    %4 = tpu.matmul %2, %3, %cst {dimension_numbers = #tpu.dot_dimension_numbers<[1], [0], [0], [1], [0, 0, 1, 1], [], []>} : vector<32x32xbf16>, vector<32x1280xbf16>, vector<32x1280xf32> -> vector<32x1280xf32>
    %5 = vector.shape_cast %4 : vector<32x1280xf32> to vector<2x16x1280xf32>
    %6 = vector.extract_strided_slice %5 {offsets = [0, 0, 0], sizes = [2, 16, 128], strides = [1, 1, 1]} : vector<2x16x1280xf32> to vector<2x16x128xf32>
    %cst_4 = arith.constant dense<0xFF800000> : vector<2x128xf32>
    %7 = vector.multi_reduction <maximumf>, %6, %cst_4 [1] : vector<2x16x128xf32> to vector<2x128xf32>
    %c0_5 = arith.constant 0 : index
    %c0_6 = arith.constant 0 : index
    %8 = vector.load %arg3[%c0_5, %c0_6] : memref<4x128xf32, #tpu.memory_space<vmem>>, vector<1x128xf32>
    %9 = vector.broadcast %8 : vector<1x128xf32> to vector<2x128xf32>
    %10 = arith.addf %7, %9 : vector<2x128xf32>
    %cst_7 = arith.constant 0.000000e+00 : f32
    %11 = vector.broadcast %cst_7 : f32 to vector<2x128xf32>
    %12 = arith.maximumf %10, %11 : vector<2x128xf32>
    %13 = vector.extract_strided_slice %5 {offsets = [0, 0, 128], sizes = [2, 15, 128], strides = [1, 1, 1]} : vector<2x16x1280xf32> to vector<2x15x128xf32>
    %14 = vector.extract_strided_slice %5 {offsets = [0, 1, 256], sizes = [2, 15, 128], strides = [1, 1, 1]} : vector<2x16x1280xf32> to vector<2x15x128xf32>
    %15 = arith.addf %13, %14 : vector<2x15x128xf32>
    %cst_8 = arith.constant dense<0xFF800000> : vector<2x128xf32>
    %16 = vector.multi_reduction <maximumf>, %15, %cst_8 [1] : vector<2x15x128xf32> to vector<2x128xf32>
    %c1 = arith.constant 1 : index
    %c0_9 = arith.constant 0 : index
    %17 = vector.load %arg3[%c1, %c0_9] : memref<4x128xf32, #tpu.memory_space<vmem>>, vector<1x128xf32>
    %18 = vector.broadcast %17 : vector<1x128xf32> to vector<2x128xf32>
    %19 = arith.addf %16, %18 : vector<2x128xf32>
    %cst_10 = arith.constant 0.000000e+00 : f32
    %20 = vector.broadcast %cst_10 : f32 to vector<2x128xf32>
    %21 = arith.maximumf %19, %20 : vector<2x128xf32>
    %22 = vector.extract_strided_slice %5 {offsets = [0, 0, 384], sizes = [2, 14, 128], strides = [1, 1, 1]} : vector<2x16x1280xf32> to vector<2x14x128xf32>
    %23 = vector.extract_strided_slice %5 {offsets = [0, 1, 512], sizes = [2, 14, 128], strides = [1, 1, 1]} : vector<2x16x1280xf32> to vector<2x14x128xf32>
    %24 = arith.addf %22, %23 : vector<2x14x128xf32>
    %25 = vector.extract_strided_slice %5 {offsets = [0, 2, 640], sizes = [2, 14, 128], strides = [1, 1, 1]} : vector<2x16x1280xf32> to vector<2x14x128xf32>
    %26 = arith.addf %24, %25 : vector<2x14x128xf32>
    %cst_11 = arith.constant dense<0xFF800000> : vector<2x128xf32>
    %27 = vector.multi_reduction <maximumf>, %26, %cst_11 [1] : vector<2x14x128xf32> to vector<2x128xf32>
    %c2 = arith.constant 2 : index
    %c0_12 = arith.constant 0 : index
    %28 = vector.load %arg3[%c2, %c0_12] : memref<4x128xf32, #tpu.memory_space<vmem>>, vector<1x128xf32>
    %29 = vector.broadcast %28 : vector<1x128xf32> to vector<2x128xf32>
    %30 = arith.addf %27, %29 : vector<2x128xf32>
    %cst_13 = arith.constant 0.000000e+00 : f32
    %31 = vector.broadcast %cst_13 : f32 to vector<2x128xf32>
    %32 = arith.maximumf %30, %31 : vector<2x128xf32>
    %33 = vector.extract_strided_slice %5 {offsets = [0, 0, 768], sizes = [2, 13, 128], strides = [1, 1, 1]} : vector<2x16x1280xf32> to vector<2x13x128xf32>
    %34 = vector.extract_strided_slice %5 {offsets = [0, 1, 896], sizes = [2, 13, 128], strides = [1, 1, 1]} : vector<2x16x1280xf32> to vector<2x13x128xf32>
    %35 = arith.addf %33, %34 : vector<2x13x128xf32>
    %36 = vector.extract_strided_slice %5 {offsets = [0, 2, 1024], sizes = [2, 13, 128], strides = [1, 1, 1]} : vector<2x16x1280xf32> to vector<2x13x128xf32>
    %37 = arith.addf %35, %36 : vector<2x13x128xf32>
    %38 = vector.extract_strided_slice %5 {offsets = [0, 3, 1152], sizes = [2, 13, 128], strides = [1, 1, 1]} : vector<2x16x1280xf32> to vector<2x13x128xf32>
    %39 = arith.addf %37, %38 : vector<2x13x128xf32>
    %cst_14 = arith.constant dense<0xFF800000> : vector<2x128xf32>
    %40 = vector.multi_reduction <maximumf>, %39, %cst_14 [1] : vector<2x13x128xf32> to vector<2x128xf32>
    %c3 = arith.constant 3 : index
    %c0_15 = arith.constant 0 : index
    %41 = vector.load %arg3[%c3, %c0_15] : memref<4x128xf32, #tpu.memory_space<vmem>>, vector<1x128xf32>
    %42 = vector.broadcast %41 : vector<1x128xf32> to vector<2x128xf32>
    %43 = arith.addf %40, %42 : vector<2x128xf32>
    %cst_16 = arith.constant 0.000000e+00 : f32
    %44 = vector.broadcast %cst_16 : f32 to vector<2x128xf32>
    %45 = arith.maximumf %43, %44 : vector<2x128xf32>
    %46 = tpu.concatenate %12, %21, %32, %45 in 1 : vector<2x128xf32>, vector<2x128xf32>, vector<2x128xf32>, vector<2x128xf32> -> vector<2x512xf32>
    %c0_17 = arith.constant 0 : index
    %c0_18 = arith.constant 0 : index
    %47 = vector.load %arg4[%c0_17, %c0_18] : memref<512x2xf32, #tpu.memory_space<vmem>>, vector<512x2xf32>
    %cst_19 = arith.constant dense<0.000000e+00> : vector<2x2xf32>
    %48 = tpu.matmul %46, %47, %cst_19 {dimension_numbers = #tpu.dot_dimension_numbers<[1], [0], [0], [1], [0, 0, 1, 1], [], []>} : vector<2x512xf32>, vector<512x2xf32>, vector<2x2xf32> -> vector<2x2xf32>
    %c0_20 = arith.constant 0 : index
    %c0_21 = arith.constant 0 : index
    %49 = vector.load %arg5[%c0_20, %c0_21] : memref<1x2xf32, #tpu.memory_space<vmem>>, vector<1x2xf32>
    %50 = vector.broadcast %49 : vector<1x2xf32> to vector<2x2xf32>
    %51 = arith.addf %48, %50 : vector<2x2xf32>
    %cst_22 = arith.constant dense<0xFF800000> : vector<2xf32>
    %52 = vector.multi_reduction <maximumf>, %51, %cst_22 [1] : vector<2x2xf32> to vector<2xf32>
    %53 = vector.shape_cast %52 : vector<2xf32> to vector<2x1xf32>
    %54 = vector.broadcast %53 : vector<2x1xf32> to vector<2x2xf32>
    %55 = arith.subf %51, %54 : vector<2x2xf32>
    %56 = math.exp %55 : vector<2x2xf32>
    %cst_23 = arith.constant dense<0.000000e+00> : vector<2xf32>
    %57 = vector.multi_reduction <add>, %56, %cst_23 [1] : vector<2x2xf32> to vector<2xf32>
    %58 = vector.shape_cast %57 : vector<2xf32> to vector<2x1xf32>
    %59 = vector.broadcast %58 : vector<2x1xf32> to vector<2x2xf32>
    %60 = arith.divf %56, %59 : vector<2x2xf32>
    %c0_24 = arith.constant 0 : index
    %c0_25 = arith.constant 0 : index
    %61 = vector.load %arg6[%c0_24, %c0_25] : memref<2x2xf32, #tpu.memory_space<vmem>>, vector<2x2xf32>
    tpu.vector_store %arg6[%c0_24, %c0_25], %60 {strides = array<i32>} : memref<2x2xf32, #tpu.memory_space<vmem>>, vector<2x2xf32>,
    return
  }
  func.func @transform_0(%arg0: i32) -> (i32, i32, i32) {
    %c0_i32 = arith.constant 0 : i32
    %c0_i32_0 = arith.constant 0 : i32
    %c0_i32_1 = arith.constant 0 : i32
    return %arg0, %c0_i32, %c0_i32_0 : i32, i32, i32
  }
  func.func @transform_1(%arg0: i32) -> (i32, i32) {
    %c0_i32 = arith.constant 0 : i32
    %c0_i32_0 = arith.constant 0 : i32
    %c0_i32_1 = arith.constant 0 : i32
    return %c0_i32, %c0_i32_0 : i32, i32
  }
  func.func @transform_2(%arg0: i32) -> (i32, i32) {
    %c0_i32 = arith.constant 0 : i32
    %c0_i32_0 = arith.constant 0 : i32
    %c0_i32_1 = arith.constant 0 : i32
    return %c0_i32, %c0_i32_0 : i32, i32
  }
  func.func @transform_3(%arg0: i32) -> (i32, i32) {
    %c0_i32 = arith.constant 0 : i32
    %c0_i32_0 = arith.constant 0 : i32
    %c0_i32_1 = arith.constant 0 : i32
    return %c0_i32, %c0_i32_0 : i32, i32
  }
  func.func @transform_4(%arg0: i32) -> (i32, i32) {
    %c0_i32 = arith.constant 0 : i32
    %c0_i32_0 = arith.constant 0 : i32
    %c0_i32_1 = arith.constant 0 : i32
    return %c0_i32, %c0_i32_0 : i32, i32
  }
  func.func @transform_5(%arg0: i32) -> (i32, i32) {
    %c0_i32 = arith.constant 0 : i32
    %c0_i32_0 = arith.constant 0 : i32
    return %arg0, %c0_i32 : i32, i32
  }
}

</mosaic_0001>

<bundles_post_ra>
// kernel: tpu_custom_call.1
= control target key start
LH: loop header
LB: loop body
LE: loop exit
PB: predicated region body
PF: predicated region fallthrough
CT: control target
= control target key end

     0   :  { %v1121_v2 = vmov 0   ;;  %vm148_vm0 = vcmask 261120   ;;  %s1498_s0 = inlined_call_operand.vmem [shape: f32[2,16,32], index: 0, kind: input, shape index: {}]   ;;  %s1499_s1 = inlined_call_operand.vmem [shape: bf16[32,1280], index: 1, kind: input, shape index: {}]   ;;  %s1500_s2 = inlined_call_operand.vmem [shape: f32[4,128], index: 2, kind: input, shape index: {}]   ;;  %s1501_s3 = inlined_call_operand.vmem [shape: f32[512,2], index: 3, kind: input, shape index: {}]   ;;  %s1502_s4 = inlined_call_operand.vmem [shape: f32[1,2], index: 4, kind: input, shape index: {}]   ;;  %s1503_s5 = inlined_call_operand.hbm [shape: f32[2,2], index: 5, kind: output, shape index: {}]  }
   0x1   :  { %v1063_v0 = vld [vmem:[%s1499_s1 + $0x4] ss:$40 sps:$4 sm:$0xff]   ;;  %v1065_v1 = vld [vmem:[%s1499_s1] ss:$40 sps:$4 sm:$0xff]   ;;  %187 = vmatprep.mubr.bf16.mxu0 %v1121_v2  ;;  %197 = vmatprep.mubr.bf16.mxu1 %v1121_v2  ;;  %v1066_v3 = vld [vmem:[%s1499_s1 + $0x54] ss:$40 sps:$4 sm:$0xff]  }
   0x2   :  { %155 = vmatprep.subr.bf16.mxu0 %v1063_v0  ;;  %1057 = vmatprep.subr.bf16.mxu1 %v1063_v0  ;;  %v1068_v4 = vld [vmem:[%s1499_s1 + $0x50] ss:$40 sps:$4 sm:$0xff]   ;;  %v22_v5 = vld [vmem:[%s1498_s0] sm:$0xff]  ;;  %v23_v6 = vld [vmem:[%s1498_s0 + $0x8] sm:$0xff] }
   0x3   :  { %156 = vmatpush1.bf16.msra.mxu0 %v1065_v1  ;;  %1059 = vmatpush1.bf16.msra.mxu1 %v1065_v1  ;;  %v24_v7 = vld [vmem:[%s1498_s0 + $0x10] sm:$0xff]  ;;  %v25_v8 = vld [vmem:[%s1498_s0 + $0x18] sm:$0xff]  ;;  %v26_v10 = vpack.c.bf16 %v23_v6, %v22_v5  ;;  %v1080_v16 = vld [vmem:[%s1499_s1 + $0x64] ss:$40 sps:$4 sm:$0xff]  }
   0x4   :  { %157 = vmatprep.subr.bf16.mxu0 %v1066_v3  ;;  %1058 = vmatprep.subr.bf16.mxu1 %v1066_v3  ;;  %v1071_v9 = vld [vmem:[%s1499_s1 + $0xc] ss:$40 sps:$4 sm:$0xff]   ;;  %v27_v11 = vpack.c.bf16 %v25_v8, %v24_v7  ;;  %v1069_v13 = vld [vmem:[%s1499_s1 + $0x8] ss:$40 sps:$4 sm:$0xff]   ;;  %v1077_v15 = vld [vmem:[%s1499_s1 + $0x5c] ss:$40 sps:$4 sm:$0xff]  }
   0x5   :  { %v1074_v12 = vld [vmem:[%s1499_s1 + $0x14] ss:$40 sps:$4 sm:$0xff]   ;;  %v1072_v14 = vld [vmem:[%s1499_s1 + $0x10] ss:$40 sps:$4 sm:$0xff]   ;;  %v1078_v18 = vld [vmem:[%s1499_s1 + $0x60] ss:$40 sps:$4 sm:$0xff]  }
   0x6   :  { %v1075_v17 = vld [vmem:[%s1499_s1 + $0x58] ss:$40 sps:$4 sm:$0xff]   ;;  %v1083_v19 = vld [vmem:[%s1499_s1 + $0x1c] ss:$40 sps:$4 sm:$0xff]  }
   0x7   :  { %158 = vmatpush1.bf16.msra.mxu0 %v1068_v4  ;;  %1060 = vmatpush1.bf16.msra.mxu1 %v1068_v4  ;;  %v1086_v20 = vld [vmem:[%s1499_s1 + $0x24] ss:$40 sps:$4 sm:$0xff]  }
   0x8   :  { %208 = vmatprep.subr.bf16.mxu1 %v1071_v9  ;;  %261 = vmatprep.subr.bf16.mxu0 %v1074_v12 }
   0xa   :  { %908 = vmatmul.mubr.msk.bf16.vlgmr.msra.gmra.mrb[0].mxu0 %vm148_vm0, %v26_v10  ;;  %909 = vmatmul.mubr.msk.bf16.vlgmr.msra.gmra.mrb[0].mxu1 %vm148_vm0, %v27_v11 }
   0xb   :  { %209 = vmatpush1.bf16.msra.mxu1 %v1069_v13  ;;  %262 = vmatpush1.bf16.msra.mxu0 %v1072_v14 }
   0xc   :  { %210 = vmatprep.subr.bf16.mxu1 %v1077_v15  ;;  %263 = vmatprep.subr.bf16.mxu0 %v1080_v16 }
   0xd   :  { %240 = vmatprep.mubr.bf16.mxu1 %v1121_v2  ;;  %293 = vmatprep.mubr.bf16.mxu0 %v1121_v2 }
   0xe   :  { %10 = vsyncpa [#allocation3], 0  ;;  %v1081_v21 = vld [vmem:[%s1499_s1 + $0x18] ss:$40 sps:$4 sm:$0xff]   ;;  %v1089_v23 = vld [vmem:[%s1499_s1 + $0x6c] ss:$40 sps:$4 sm:$0xff]  }
   0xf   :  { %211 = vmatpush1.bf16.msra.mxu1 %v1075_v17  ;;  %264 = vmatpush1.bf16.msra.mxu0 %v1078_v18  ;;  %v1084_v22 = vld [vmem:[%s1499_s1 + $0x20] ss:$40 sps:$4 sm:$0xff]   ;;  %v1092_v24 = vld [vmem:[%s1499_s1 + $0x74] ss:$40 sps:$4 sm:$0xff]   ;;  %v1090_v26 = vld [vmem:[%s1499_s1 + $0x70] ss:$40 sps:$4 sm:$0xff]  }
  0x10   :  { %314 = vmatprep.subr.bf16.mxu1 %v1083_v19  ;;  %367 = vmatprep.subr.bf16.mxu0 %v1086_v20  ;;  %v1087_v25 = vld [vmem:[%s1499_s1 + $0x68] ss:$40 sps:$4 sm:$0xff]   ;;  %v666_v27 = vld [vmem:[%s1501_s3 + $0x80] sm:$0xff]  ;;  %v669_v34 = vld [vmem:[%s1501_s3 + $0x98] sm:$0xff]  ;;  %vm447_vm1 = vcmask 1046528   ;;  %vm509_vm2 = vcmask 1045504  }
  0x11   :  { %v667_v28 = vld [vmem:[%s1501_s3 + $0x88] sm:$0xff]  ;;  %v650_v30 = vld [vmem:[%s1501_s3] sm:$0xff]  ;;  %v668_v33 = vld [vmem:[%s1501_s3 + $0x90] sm:$0xff]  ;;  %vm632_vm3 = vcmask 1041409   ;;  %vm589_vm4 = vcmask 1044480   ;;  %vm861_vm5 = vcmask 9216  }
  0x12   :  { %910 = vmatmul.mubr.msk.bf16.vlgmr.msra.gmra.mrb[4].mxu1 %vm148_vm0, %v26_v10  ;;  %912 = vmatmul.mubr.msk.bf16.vlgmr.msra.gmra.mrb[4].mxu0 %vm148_vm0, %v26_v10  ;;  %v993_v29 = vpack.c.bf16 %v667_v28, %v666_v27  ;;  %v651_v31 = vld [vmem:[%s1501_s3 + $0x8] sm:$0xff]  ;;  %v997_v35 = vpack.c.bf16 %v669_v34, %v668_v33  ;;  %v652_v36 = vld [vmem:[%s1501_s3 + $0x10] sm:$0xff]  ;;  %v653_v37 = vld [vmem:[%s1501_s3 + $0x18] sm:$0xff] }
  0x13   :  { %315 = vmatpush1.bf16.msra.mxu1 %v1081_v21  ;;  %368 = vmatpush1.bf16.msra.mxu0 %v1084_v22  ;;  %v995_v32 = vpack.c.bf16 %v651_v31, %v650_v30  ;;  %v999_v38 = vpack.c.bf16 %v653_v37, %v652_v36  ;;  %v670_v39 = vld [vmem:[%s1501_s3 + $0xa0] sm:$0xff]  ;;  %v671_v40 = vld [vmem:[%s1501_s3 + $0xa8] sm:$0xff]  ;;  %v672_v45 = vld [vmem:[%s1501_s3 + $0xb0] sm:$0xff] }
  0x14   :  { %250 = vmatprep.mubr.bf16.mxu1 %v1121_v2  ;;  %303 = vmatprep.mubr.bf16.mxu0 %v1121_v2  ;;  %v1001_v41 = vpack.c.bf16 %v671_v40, %v670_v39  ;;  %v654_v42 = vld [vmem:[%s1501_s3 + $0x20] sm:$0xff]  ;;  %v655_v43 = vld [vmem:[%s1501_s3 + $0x28] sm:$0xff]  ;;  %v673_v46 = vld [vmem:[%s1501_s3 + $0xb8] sm:$0xff] }
  0x15   :  { %316 = vmatprep.subr.bf16.mxu1 %v1089_v23  ;;  %369 = vmatprep.subr.bf16.mxu0 %v1092_v24  ;;  %v1003_v44 = vpack.c.bf16 %v655_v43, %v654_v42  ;;  %v1005_v47 = vpack.c.bf16 %v673_v46, %v672_v45  ;;  %v656_v48 = vld [vmem:[%s1501_s3 + $0x30] sm:$0xff]  ;;  %v657_v49 = vld [vmem:[%s1501_s3 + $0x38] sm:$0xff]  ;;  %v674_v51 = vld [vmem:[%s1501_s3 + $0xc0] sm:$0xff] }
  0x16   :  { %v1007_v50 = vpack.c.bf16 %v657_v49, %v656_v48  ;;  %v675_v52 = vld [vmem:[%s1501_s3 + $0xc8] sm:$0xff]  ;;  %v658_v54 = vld [vmem:[%s1501_s3 + $0x40] sm:$0xff]  ;;  %v676_v57 = vld [vmem:[%s1501_s3 + $0xd0] sm:$0xff] }
  0x17   :  { %317 = vmatpush1.bf16.msra.mxu1 %v1087_v25  ;;  %370 = vmatpush1.bf16.msra.mxu0 %v1090_v26  ;;  %v1009_v53 = vpack.c.bf16 %v675_v52, %v674_v51  ;;  %v659_v55 = vld [vmem:[%s1501_s3 + $0x48] sm:$0xff]  ;;  %v677_v58 = vld [vmem:[%s1501_s3 + $0xd8] sm:$0xff]  ;;  %v660_v60 = vld [vmem:[%s1501_s3 + $0x50] sm:$0xff] }
  0x18   :  { %994 = vmatprep.subr.bf16.mxu1 %v993_v29  ;;  %v1011_v56 = vpack.c.bf16 %v659_v55, %v658_v54  ;;  %v1013_v59 = vpack.c.bf16 %v677_v58, %v676_v57  ;;  %v661_v61 = vld [vmem:[%s1501_s3 + $0x58] sm:$0xff]  ;;  %v698_v62 = vld [vmem:[%s1501_s3 + $0x180] sm:$0xff]  ;;  %v699_v0 = vld [vmem:[%s1501_s3 + $0x188] sm:$0xff] }
  0x19   :  { %v1015_v63 = vpack.c.bf16 %v661_v61, %v660_v60  ;;  %v682_v1 = vld [vmem:[%s1501_s3 + $0x100] sm:$0xff]  ;;  %v1025_v3 = vpack.c.bf16 %v699_v0, %v698_v62  ;;  %v679_v6 = vld [vmem:[%s1501_s3 + $0xe8] sm:$0xff]  ;;  %v701_v12 = vld [vmem:[%s1501_s3 + $0x198] sm:$0xff] }
  0x1a   :  { %911 = vmatmul.mubr.msk.bf16.gmra.mrb[8].mxu1 %vm148_vm0, %v27_v11  ;;  %913 = vmatmul.mubr.msk.bf16.gmra.mrb[8].mxu0 %vm148_vm0, %v27_v11  ;;  %v678_v5 = vld [vmem:[%s1501_s3 + $0xe0] sm:$0xff]  ;;  %v663_v9 = vld [vmem:[%s1501_s3 + $0x68] sm:$0xff]  ;;  %v684_v13 = vld [vmem:[%s1501_s3 + $0x110] sm:$0xff] }
  0x1b   :  { %346 = vmatprep.mubr.bf16.mxu1 %v1121_v2  ;;  %399 = vmatprep.mubr.bf16.mxu0 %v1121_v2  ;;  %v1017_v7 = vpack.c.bf16 %v679_v6, %v678_v5  ;;  %v662_v8 = vld [vmem:[%s1501_s3 + $0x60] sm:$0xff]  ;;  %v685_v14 = vld [vmem:[%s1501_s3 + $0x118] sm:$0xff]  ;;  %v680_v17 = vld [vmem:[%s1501_s3 + $0xf0] sm:$0xff] }
  0x1c   :  { %1026 = vmatprep.subr.bf16.mxu0 %v1025_v3  ;;  %v1031_v16 = vpack.c.bf16 %v685_v14, %v684_v13  ;;  %v681_v18 = vld [vmem:[%s1501_s3 + $0xf8] sm:$0xff]  ;;  %v664_v20 = vld [vmem:[%s1501_s3 + $0x70] sm:$0xff]  ;;  %v702_v22 = vld [vmem:[%s1501_s3 + $0x1a0] sm:$0xff] }
  0x1d   :  { %v1021_v19 = vpack.c.bf16 %v681_v18, %v680_v17  ;;  %v665_v21 = vld [vmem:[%s1501_s3 + $0x78] sm:$0xff]  ;;  %v703_v24 = vld [vmem:[%s1501_s3 + $0x1a8] sm:$0xff]  ;;  %v686_v25 = vld [vmem:[%s1501_s3 + $0x120] sm:$0xff] }
  0x1e   :  { %v1023_v23 = vpack.c.bf16 %v665_v21, %v664_v20  ;;  %v687_v26 = vld [vmem:[%s1501_s3 + $0x128] sm:$0xff]  ;;  %v1033_v27 = vpack.c.bf16 %v703_v24, %v702_v22  ;;  %v704_v29 = vld [vmem:[%s1501_s3 + $0x1b0] sm:$0xff]  ;;  %v705_v30 = vld [vmem:[%s1501_s3 + $0x1b8] sm:$0xff] }
  0x1f   :  { %v1035_v28 = vpack.c.bf16 %v687_v26, %v686_v25  ;;  %v1037_v31 = vpack.c.bf16 %v705_v30, %v704_v29  ;;  %v689_v33 = vld [vmem:[%s1501_s3 + $0x138] sm:$0xff]  ;;  %v707_v36 = vld [vmem:[%s1501_s3 + $0x1c8] sm:$0xff]  ;;  %v692_v43 = vld [vmem:[%s1501_s3 + $0x150] sm:$0xff] }
  0x20   :  { %v691_v39 = vld [vmem:[%s1501_s3 + $0x148] sm:$0xff]  ;;  %v709_v42 = vld [vmem:[%s1501_s3 + $0x1d8] sm:$0xff]  ;;  %v710_v46 = vld [vmem:[%s1501_s3 + $0x1e0] sm:$0xff] }
  0x21   :  { %v693_v45 = vld [vmem:[%s1501_s3 + $0x158] sm:$0xff]  ;;  %v695_v51 = vld [vmem:[%s1501_s3 + $0x168] sm:$0xff]  ;;  %v712_v52 = vld [vmem:[%s1501_s3 + $0x1f0] sm:$0xff] }
  0x22   :  { %914 = vmatmul.mubr.msk.bf16.vlgmr.msra.gmra.mrb[12].mxu1 %vm148_vm0, %v26_v10  ;;  %916 = vmatmul.mubr.msk.bf16.vlgmr.msra.gmra.mrb[12].mxu0 %vm148_vm0, %v26_v10  ;;  %v700_v10 = vld [vmem:[%s1501_s3 + $0x190] sm:$0xff]  ;;  %v1047_v48 = vpack.c.bf16 %v693_v45, %v692_v43  ;;  %v697_v57 = vld [vmem:[%s1501_s3 + $0x178] sm:$0xff] }
  0x23   :  { %356 = vmatprep.mubr.bf16.mxu1 %v1121_v2  ;;  %409 = vmatprep.mubr.bf16.mxu0 %v1121_v2  ;;  %v683_v2 = vld [vmem:[%s1501_s3 + $0x108] sm:$0xff]  ;;  %v1029_v15 = vpack.c.bf16 %v701_v12, %v700_v10 }
  0x24   :  { %996 = vmatpush3.bf16.msra.mxu1 %v995_v32  ;;  %v1027_v4 = vpack.c.bf16 %v683_v2, %v682_v1  ;;  %v688_v32 = vld [vmem:[%s1501_s3 + $0x130] sm:$0xff] }
  0x25   :  { %998 = vmatprep.subr.bf16.mxu1 %v997_v35  ;;  %v1039_v34 = vpack.c.bf16 %v689_v33, %v688_v32  ;;  %v706_v35 = vld [vmem:[%s1501_s3 + $0x1c0] sm:$0xff] }
  0x26   :  { %1028 = vmatpush3.bf16.msra.mxu0 %v1027_v4  ;;  %v1041_v37 = vpack.c.bf16 %v707_v36, %v706_v35 }
  0x27   :  { %1030 = vmatprep.subr.bf16.mxu0 %v1029_v15 }
  0x28   :  { %1000 = vmatpush3.bf16.msra.mxu1 %v999_v38  ;;  %v690_v38 = vld [vmem:[%s1501_s3 + $0x140] sm:$0xff] }
  0x29   :  { %1002 = vmatprep.subr.bf16.mxu1 %v1001_v41  ;;  %v1043_v40 = vpack.c.bf16 %v691_v39, %v690_v38  ;;  %v708_v41 = vld [vmem:[%s1501_s3 + $0x1d0] sm:$0xff] }
  0x2a   :  { %915 = vmatmul.mubr.msk.bf16.gmra.mrb[16].mxu1 %vm148_vm0, %v27_v11  ;;  %917 = vmatmul.mubr.msk.bf16.gmra.mrb[16].mxu0 %vm148_vm0, %v27_v11  ;;  %v1019_v11 = vpack.c.bf16 %v663_v9, %v662_v8 }
  0x2b   :  { %1032 = vmatpush3.bf16.msra.mxu0 %v1031_v16 }
  0x2c   :  { %1004 = vmatpush3.bf16.msra.mxu1 %v1003_v44  ;;  %1034 = vmatprep.subr.bf16.mxu0 %v1033_v27  ;;  %v1045_v44 = vpack.c.bf16 %v709_v42, %v708_v41 }
  0x2d   :  { %1006 = vmatprep.subr.bf16.mxu1 %v1005_v47  ;;  %v711_v47 = vld [vmem:[%s1501_s3 + $0x1e8] sm:$0xff] }
  0x2e   :  { %v1049_v49 = vpack.c.bf16 %v711_v47, %v710_v46 }
  0x2f   :  { %1036 = vmatpush3.bf16.msra.mxu0 %v1035_v28 }
  0x30   :  { %1008 = vmatpush3.bf16.msra.mxu1 %v1007_v50  ;;  %1038 = vmatprep.subr.bf16.mxu0 %v1037_v31  ;;  %v694_v50 = vld [vmem:[%s1501_s3 + $0x160] sm:$0xff] }
  0x31   :  { %1010 = vmatprep.subr.bf16.mxu1 %v1009_v53  ;;  %v713_v53 = vld [vmem:[%s1501_s3 + $0x1f8] sm:$0xff]  ;;  %v1051_v54 = vpack.c.bf16 %v695_v51, %v694_v50  ;;  %v918_v31 = vld [vmem:[%s1500_s2] ss:$0 sm:$0xff] }
  0x32   :  { %v1053_v55 = vpack.c.bf16 %v713_v53, %v712_v52 }
  0x33   :  { %1040 = vmatpush3.bf16.msra.mxu0 %v1039_v34 }
  0x34   :  { %1012 = vmatpush3.bf16.msra.mxu1 %v1011_v56  ;;  %1042 = vmatprep.subr.bf16.mxu0 %v1041_v37  ;;  %v696_v56 = vld [vmem:[%s1501_s3 + $0x170] sm:$0xff] }
  0x35   :  { %1014 = vmatprep.subr.bf16.mxu1 %v1013_v59  ;;  %v1055_v58 = vpack.c.bf16 %v697_v57, %v696_v56 }
  0x37   :  { %1044 = vmatpush3.bf16.msra.mxu0 %v1043_v40 }
  0x38   :  { %1016 = vmatpush3.bf16.msra.mxu1 %v1015_v63  ;;  %1046 = vmatprep.subr.bf16.mxu0 %v1045_v44 }
  0x39   :  { %1018 = vmatprep.subr.bf16.mxu1 %v1017_v7 }
  0x3b   :  { %1048 = vmatpush3.bf16.msra.mxu0 %v1047_v48 }
  0x3c   :  { %1020 = vmatpush3.bf16.msra.mxu1 %v1019_v11  ;;  %1050 = vmatprep.subr.bf16.mxu0 %v1049_v49 }
  0x3d   :  { %1022 = vmatprep.subr.bf16.mxu1 %v1021_v19 }
  0x3f   :  { %1052 = vmatpush3.bf16.msra.mxu0 %v1051_v54 }
  0x40   :  { %1024 = vmatpush3.bf16.msra.mxu1 %v1023_v23  ;;  %1054 = vmatprep.subr.bf16.mxu0 %v1053_v55 }
  0x43   :  { %1056 = vmatpush3.bf16.msra.mxu0 %v1055_v58 }
  0xdd   :  { %v189_v59 = vpop.f32.mrb[0].mxu0  ;;  %v199_v60 = vpop.f32.mrb[0].mxu1 }
  0xde   :  { %v191_v61 = vpop.f32.mrb[1].mxu0  ;;  %v1437_v62 = vpop.f32.mrb[1].mxu1 }
  0xdf   :  { %v193_v63 = vpop.f32.mrb[2].mxu0  ;;  %v203_v0 = vpop.f32.mrb[2].mxu1 }
  0xe0   :  { %v420_v1 = vmax.f32 %v189_v59, %v193_v63  ;;  %v427_v2 = vmax.f32 %v199_v60, %v203_v0  ;;  %v1439_v3 = vpop.f32.mrb[3].mxu1  ;;  %v195_v4 = vpop.f32.mrb[3].mxu0 }
  0xe2   :  { %v421_v5 = vrot.slane %v420_v1, 4  ;;  %v428_v6 = vrot.slane %v427_v2, 4 }
  0xe4   :  { %v422_v7 = vmax.f32 %v420_v1, %v421_v5  ;;  %v429_v8 = vmax.f32 %v427_v2, %v428_v6 }
  0xe5   :  { %v242_v9 = vpop.f32.mrb[4].mxu1  ;;  %v295_v10 = vpop.f32.mrb[4].mxu0 }
  0xe6   :  { %v423_v11 = vrot.slane %v422_v7, 2  ;;  %v430_v12 = vrot.slane %v429_v8, 2  ;;  %v244_v13 = vpop.f32.mrb[5].mxu1  ;;  %v297_v14 = vpop.f32.mrb[5].mxu0  ;;  %v448_v15 = vrot.slane %v242_v9, 1  ;;  %v491_v16 = vrot.slane %v295_v10, 1 }
  0xe7   :  { %v510_v17 = vrot.slane %v297_v14, 2  ;;  %v246_v18 = vpop.f32.mrb[6].mxu1  ;;  %v299_v19 = vpop.f32.mrb[6].mxu0 }
  0xe8   :  { %v424_v20 = vmax.f32 %v422_v7, %v423_v11  ;;  %v431_v21 = vmax.f32 %v429_v8, %v430_v12  ;;  %v449_v22 = vrot.slane %v246_v18, 1  ;;  %v492_v23 = vrot.slane %v299_v19, 1  ;;  %v248_v24 = vpop.f32.mrb[7].mxu1  ;;  %v301_v25 = vpop.f32.mrb[7].mxu0 }
  0xe9   :  { %v511_v26 = vrot.slane %v301_v25, 2 }
  0xea   :  { %v425_v27 = vrot.slane %v424_v20, 1  ;;  %v432_v28 = vrot.slane %v431_v21, 1  ;;  %v450_v29 = vsel %vm447_vm1, %v448_v15, %v449_v22  ;;  %v459_v30 = vadd.f32 %v449_v22, %v195_v4 }
  0xeb   :  { %v458_v32 = vadd.f32 %v450_v29, %v191_v61  ;;  %v493_v33 = vsel %vm447_vm1, %v491_v16, %v492_v23  ;;  %v502_v34 = vadd.f32 %v492_v23, %v248_v24  ;;  %v512_v35 = vsel %vm509_vm2, %v510_v17, %v511_v26 }
  0xec   :  { %v426_v36 = vmax.f32 %v424_v20, %v425_v27  ;;  %v433_v37 = vmax.f32 %v431_v21, %v432_v28  ;;  %v462_v38 = vsel %vm447_vm1, %v459_v30, -inf  ;;  %v501_v39 = vadd.f32 %v493_v33, %v244_v13 }
  0xed   :  { %v463_v40 = vmax.f32 %v458_v32, %v462_v38  ;;  %v521_v41 = vadd.f32 %v511_v26, %v502_v34  ;;  %v252_v42 = vpop.f32.mrb[8].mxu1  ;;  %v305_v43 = vpop.f32.mrb[8].mxu0 }
  0xee   :  { %v439_v44 = vadd.f32 %v918_v31, %v426_v36  ;;  %v440_v45 = vadd.f32 %v918_v31, %v433_v37  ;;  %v520_v46 = vadd.f32 %v512_v35, %v501_v39  ;;  %v254_v47 = vpop.f32.mrb[9].mxu1  ;;  %v307_v48 = vpop.f32.mrb[9].mxu0  ;;  %v451_v51 = vrot.slane %v252_v42, 1 }
  0xef   :  { %v464_v49 = vrot.slane %v463_v40, 4  ;;  %v524_v50 = vsel %vm509_vm2, %v521_v41, -inf  ;;  %v494_v52 = vrot.slane %v305_v43, 1  ;;  %v256_v53 = vpop.f32.mrb[10].mxu1  ;;  %v309_v54 = vpop.f32.mrb[10].mxu0  ;;  %v513_v57 = vrot.slane %v307_v48, 2 }
  0xf0   :  { %v442_v55 = vmax.f32 %v440_v45, 0.0  ;;  %v525_v56 = vmax.f32 %v520_v46, %v524_v50  ;;  %v452_v58 = vrot.slane %v256_v53, 1  ;;  %v258_v59 = vpop.f32.mrb[11].mxu1  ;;  %v311_v60 = vpop.f32.mrb[11].mxu0  ;;  %v441_v61 = vmax.f32 %v439_v44, 0.0 }
  0xf1   :  { %v465_v63 = vmax.f32 %v463_v40, %v464_v49  ;;  %v495_v0 = vrot.slane %v309_v54, 1  ;;  %v514_v1 = vrot.slane %v311_v60, 2 }
  0xf2   :  { %v631_v2 = vrot.slane %v442_v55, 7  ;;  %v526_v4 = vrot.slane %v525_v56, 4  ;;  %v453_v5 = vsel %vm447_vm1, %v451_v51, %v452_v58  ;;  %v461_v6 = vadd.f32 %v452_v58, %v1439_v3 }
  0xf3   :  { %v466_v7 = vrot.slane %v465_v63, 2  ;;  %v460_v8 = vadd.f32 %v453_v5, %v1437_v62  ;;  %v496_v9 = vsel %vm447_vm1, %v494_v52, %v495_v0  ;;  %v504_v10 = vadd.f32 %v495_v0, %v258_v59 }
  0xf4   :  { %v527_v11 = vmax.f32 %v525_v56, %v526_v4  ;;  %v470_v12 = vsel %vm447_vm1, %v461_v6, -inf  ;;  %v503_v13 = vadd.f32 %v496_v9, %v254_v47  ;;  %v515_v14 = vsel %vm509_vm2, %v513_v57, %v514_v1 }
  0xf5   :  { %v471_v15 = vmax.f32 %v460_v8, %v470_v12  ;;  %v523_v16 = vadd.f32 %v514_v1, %v504_v10  ;;  %v348_v17 = vpop.f32.mrb[12].mxu1  ;;  %v401_v18 = vpop.f32.mrb[12].mxu0  ;;  %v1456_v19 = vsel %vm632_vm3, %v631_v2, %v441_v61  ;;  %v467_v3 = vmax.f32 %v465_v63, %v466_v7  ;;  %v919_v1 = vld [vmem:[%s1500_s2 + $0x1] ss:$0 sm:$0xff] }
  0xf6   :  { %v528_v20 = vrot.slane %v527_v11, 2  ;;  %v522_v21 = vadd.f32 %v515_v14, %v503_v13  ;;  %v350_v62 = vpop.f32.mrb[13].mxu1  ;;  %v571_v22 = vrot.slane %v401_v18, 2  ;;  %v403_v23 = vpop.f32.mrb[13].mxu0 }
  0xf7   :  { %v472_v24 = vrot.slane %v471_v15, 4  ;;  %v532_v25 = vsel %vm509_vm2, %v523_v16, -inf  ;;  %v352_v26 = vpop.f32.mrb[14].mxu1  ;;  %v590_v27 = vrot.slane %v403_v23, 3  ;;  %v405_v28 = vpop.f32.mrb[14].mxu0  ;;  %v553_v35 = vrot.slane %v350_v62, 1 }
  0xf8   :  { %v529_v29 = vmax.f32 %v527_v11, %v528_v20  ;;  %v533_v30 = vmax.f32 %v522_v21, %v532_v25  ;;  %v354_v31 = vpop.f32.mrb[15].mxu1  ;;  %v572_v32 = vrot.slane %v405_v28, 2  ;;  %v407_v33 = vpop.f32.mrb[15].mxu0  ;;  %v468_v41 = vrot.slane %v467_v3, 1  ;;  %v920_v21 = vld [vmem:[%s1500_s2 + $0x2] ss:$0 sm:$0xff] }
  0xf9   :  { %v473_v34 = vmax.f32 %v471_v15, %v472_v24  ;;  %v554_v36 = vrot.slane %v354_v31, 1  ;;  %v591_v37 = vrot.slane %v407_v33, 3 }
  0xfa   :  { %v530_v38 = vrot.slane %v529_v29, 1  ;;  %v534_v39 = vrot.slane %v533_v30, 4  ;;  %v573_v40 = vsel %vm509_vm2, %v571_v22, %v572_v32  ;;  %v469_v57 = vmax.f32 %v467_v3, %v468_v41 }
  0xfb   :  { %v474_v42 = vrot.slane %v473_v34, 2  ;;  %v555_v43 = vsel %vm447_vm1, %v553_v35, %v554_v36  ;;  %v564_v44 = vadd.f32 %v554_v36, %v352_v26  ;;  %v592_v45 = vsel %vm589_vm4, %v590_v27, %v591_v37 }
  0xfc   :  { %v535_v46 = vmax.f32 %v533_v30, %v534_v39  ;;  %v563_v47 = vadd.f32 %v555_v43, %v348_v17  ;;  %v531_v58 = vmax.f32 %v529_v29, %v530_v38  ;;  %v483_v16 = vadd.f32 %v919_v1, %v469_v57 }
  0xfd   :  { %v475_v48 = vmax.f32 %v473_v34, %v474_v42  ;;  %v582_v49 = vadd.f32 %v572_v32, %v564_v44  ;;  %v358_v50 = vpop.f32.mrb[16].mxu1  ;;  %v411_v51 = vpop.f32.mrb[16].mxu0 }
  0xfe   :  { %v536_v52 = vrot.slane %v535_v46, 2  ;;  %v581_v53 = vadd.f32 %v573_v40, %v563_v47  ;;  %v360_v54 = vpop.f32.mrb[17].mxu1  ;;  %v574_v55 = vrot.slane %v411_v51, 2  ;;  %v413_v56 = vpop.f32.mrb[17].mxu0  ;;  %v545_v28 = vadd.f32 %v920_v21, %v531_v58 }
  0xff   :  { %v601_v59 = vadd.f32 %v591_v37, %v582_v49  ;;  %v362_v60 = vpop.f32.mrb[18].mxu1  ;;  %v593_v61 = vrot.slane %v413_v56, 3  ;;  %v415_v63 = vpop.f32.mrb[18].mxu0  ;;  %v476_v0 = vrot.slane %v475_v48, 1  ;;  %v556_v5 = vrot.slane %v360_v54, 1 }
 0x100   :  { %v537_v2 = vmax.f32 %v535_v46, %v536_v52  ;;  %v600_v4 = vadd.f32 %v592_v45, %v581_v53  ;;  %v364_v6 = vpop.f32.mrb[19].mxu1  ;;  %v575_v7 = vrot.slane %v415_v63, 2  ;;  %v417_v8 = vpop.f32.mrb[19].mxu0  ;;  %v485_v31 = vmax.f32 %v483_v16, 0.0 }
 0x101   :  { %v604_v9 = vsel %vm589_vm4, %v601_v59, -inf  ;;  %v557_v10 = vrot.slane %v364_v6, 1  ;;  %v594_v11 = vrot.slane %v417_v8, 3  ;;  %v477_v12 = vmax.f32 %v475_v48, %v476_v0 }
 0x102   :  { %v538_v13 = vrot.slane %v537_v2, 1  ;;  %v605_v14 = vmax.f32 %v600_v4, %v604_v9  ;;  %v576_v15 = vsel %vm509_vm2, %v574_v55, %v575_v7  ;;  %v547_v39 = vmax.f32 %v545_v28, 0.0 }
 0x103   :  { %v558_v17 = vsel %vm447_vm1, %v556_v5, %v557_v10  ;;  %v566_v18 = vadd.f32 %v557_v10, %v362_v60  ;;  %v595_v3 = vsel %vm589_vm4, %v593_v61, %v594_v11  ;;  %v484_v20 = vadd.f32 %v919_v1, %v477_v12  ;;  %v922_v60 = vld [vmem:[%s1502_s4] ss:$0 sm:$0xff] }
 0x104   :  { %v539_v62 = vmax.f32 %v537_v2, %v538_v13  ;;  %v606_v22 = vrot.slane %v605_v14, 4  ;;  %v565_v23 = vadd.f32 %v558_v17, %v358_v50  ;;  %v921_v50 = vld [vmem:[%s1500_s2 + $0x3] ss:$0 sm:$0xff]  ;;  %s1122_s2 = smov [#allocation2]  }
 0x105   :  { %v584_v24 = vadd.f32 %v575_v7, %v566_v18  ;;  %v486_v25 = vmax.f32 %v484_v20, 0.0  ;;  %s880_s4 = sshll.u32 %s1122_s2, 4  ;;  %s881_s4 = int_to_ptr.vmem [resolvable:$true] %s880_s4 }
 0x106   :  { %v607_v26 = vmax.f32 %v605_v14, %v606_v22  ;;  %v583_v27 = vadd.f32 %v576_v15, %v565_v23  ;;  %v546_v29 = vadd.f32 %v920_v21, %v539_v62  ;;  %s1097_s15 = scalar_lea.vmem %s881_s4, 32  ;;  %p1102_p1 = scmp.lt.s32.totalorder %s881_s4, %s881_s4 }
 0x107   :  { %v603_v30 = vadd.f32 %v594_v11, %v584_v24  ;;  %v637_v32 = vrot.slane %v486_v25, 7  ;;  %p1098_p0 = scmp.ne.s32.totalorder %s881_s4, %s1097_s15  ;;  %p1103_p2 = scmp.lt.s32.totalorder %s1097_s15, %s1097_s15 }
 0x108   :  { %v608_v33 = vrot.slane %v607_v26, 2  ;;  %v602_v34 = vadd.f32 %v595_v3, %v583_v27  ;;  %v548_v35 = vmax.f32 %v546_v29, 0.0 }
 0x109   :  { %v612_v36 = vsel %vm589_vm4, %v603_v30, -inf  ;;  %v638_v37 = vsel %vm632_vm3, %v637_v32, %v485_v31  ;;  %p1104_p3 = por %p1103_p2, %p1102_p1 }
 0x10a   :  { %v613_v38 = vmax.f32 %v602_v34, %v612_v36  ;;  %785 = vmatprep.mubr.f32.mxu1 %v638_v37  ;;  %v642_v40 = vrot.slane %v548_v35, 7  ;;  %v609_v41 = vmax.f32 %v607_v26, %v608_v33 }
 0x10b   :  { %786 = vmatmul.mubr.f32.vlgmr.msra.gmra.mrb[20].mxu1 %v1456_v19  ;;  %p1105_p4 = pnand %p1104_p3, %p1098_p0 }
 0x10c   :  { %v614_v42 = vrot.slane %v613_v38, 4  ;;  %v643_v43 = vsel %vm632_vm3, %v642_v40, %v547_v39  ;;  %v610_v46 = vrot.slane %v609_v41, 1 }
 0x10e   :  { %v615_v44 = vmax.f32 %v613_v38, %v614_v42  ;;  %v611_v48 = vmax.f32 %v609_v41, %v610_v46 }
 0x110   :  { %v616_v45 = vrot.slane %v615_v44, 2  ;;  %v625_v52 = vadd.f32 %v921_v50, %v611_v48 }
 0x112   :  { %v617_v47 = vmax.f32 %v615_v44, %v616_v45  ;;  %v627_v55 = vmax.f32 %v625_v52, 0.0 }
 0x114   :  { %v618_v49 = vrot.slane %v617_v47, 1 }
 0x116   :  { %v619_v51 = vmax.f32 %v617_v47, %v618_v49 }
 0x118   :  { %v626_v53 = vadd.f32 %v921_v50, %v619_v51 }
 0x11a   :  { %v628_v54 = vmax.f32 %v626_v53, 0.0 }
 0x11c   :  { %v647_v19 = vrot.slane %v628_v54, 7 }
 0x11e   :  { %v648_v56 = vsel %vm632_vm3, %v647_v19, %v627_v55 }
 0x11f   :  { %855 = vmatprep.mubr.f32.mxu0 %v648_v56 }
 0x120   :  { %856 = vmatmul.mubr.f32.vlgmr.msra.gmra.mrb[20].mxu0 %v643_v43 }
 0x1de   :  { %v955_v57 = vpop.f32.mrb[20].mxu1 }
 0x1df   :  { %v956_v58 = vpop.f32.mrb[21].mxu1 }
 0x1e0   :  { %v957_v59 = vadd.f32 %v956_v58, %v955_v57 }
 0x1e2   :  { %v788_v0 = vadd.f32 %v957_v59, %v922_v60 }
 0x1f3   :  { %v990_v61 = vpop.f32.mrb[20].mxu0 }
 0x1f4   :  { %v991_v63 = vpop.f32.mrb[21].mxu0 }
 0x1f5   :  { %v992_v1 = vadd.f32 %v991_v63, %v990_v61 }
 0x1f7   :  { %v858_v2 = vadd.f32 %v992_v1, %v788_v0 }
 0x1f9   :  { %v862_v4 = vsel %vm861_vm5, %v858_v2, -inf }
 0x1fa   :  { %863 = vmax.xlane.f32.xlu0 %v862_v4 }
 0x287   :  { %v864_v5 = vpop.xlane.xlu0 %863 }
 0x288   :  { %v865_v6 = vsub.f32 %v858_v2, %v864_v5 }
 0x28a   :  { %v866_v7 = vmul.f32 1.442695, %v865_v6 }
 0x28c   :  { %1093 = vpow2.f32 %v866_v7 }
 0x296   :  { %v1094_v8 = vpop.eup %1093 }
 0x297   :  { %v868_v9 = vsel %vm861_vm5, %v1094_v8, 0.0 }
 0x298   :  { %869 = vadd.xlane.f32.xlu0 %v868_v9 }
 0x325   :  { %v870_v10 = vpop.xlane.xlu0 %869 }
 0x326   :  { %1095 = vrcp.f32 %v870_v10 }
 0x330   :  { %v1096_v11 = vpop.eup %1095 }
 0x331   :  { %v872_v12 = vmul.f32 %v1096_v11, %v1094_v8 }
 0x333   :  { %873 = vst.msk [vmem:[#allocation2] sm:$0x3] %vm861_vm5, %v872_v12 }
 0x334   :  { %1108 = shalt.err (!%p1105_p4)
}
 0x335   :  { %s1109_s18 = scalar_lea.hbm %s1503_s5, 32 }
 0x336   :  { %p1110_p5 = scmp.ne.s32.totalorder %s1503_s5, %s1109_s18  ;;  %p1113_p6 = scmp.lt.u32.totalorder %s1109_s18, %s1503_s5 }
 0x338   :  { %p1115_p7 = pnand %p1113_p6, %p1110_p5 }
 0x33a   :  { %1118 = shalt.err (!%p1115_p7)
}
 0x33b   :  { %883 = dma.vmem_to_hbm [thread:$0]  %s881_s4, 32, %s1503_s5, [#allocation3]  }
 0x33c   :  { %1119 = dma.done.wait [#allocation3], 32  }
 0x33d   :  { %1120 = vsyncadd [#allocation3], 4294967264 }
 0x33e   :  { %887 = vsyncpa [#allocation3], 1 }

</bundles_post_ra>
